<compile_context>
chip_gen: v7x
topology: tpu7x:2x2x1
jax: 0.10.0
libtpu: 0.0.40
codegen_flags: <defaults>
</compile_context>

<pallas_src>
import math
import jax
import jax.numpy as jnp
from jax.experimental import pallas as pl
from jax.experimental.pallas import tpu as pltpu


def s4d_chunk_kernel(tt_ref, cout_ref, vin_ref, lamlb_ref, u_ref, y_ref, state_ref):
    """Chunked, state-carrying causal SSM convolution.

    tt_ref    : (th, Lb, Lb)        Tt[h, q, p] = K[h, p-q] for p >= q else 0
    cout_ref  : (th, N2, Lb)        Cout[h, n, p] = Ceff[h, n] * lam[h, n]^(p+1)
    vin_ref   : (th, Lb, N2)        Vin[h, q, n]  = lam[h, n]^(Lb-1-q)
    lamlb_ref : (th, N2)  f32       lam^Lb
    u_ref     : (th, nc_sub, B, Lb) input super-block (matmul dtype)
    y_ref     : (th, nc_sub, B, Lb) output super-block
    state_ref : (th, B, N2) f32     SSM state, carried across the 'arbitrary'
                                    chunk grid axis (reset at si == 0)
    """
    si = pl.program_id(1)

    @pl.when(si == 0)
    def _init():
        state_ref[...] = jnp.zeros_like(state_ref)

    th, nc_sub, B, Lb = u_ref.shape
    mm_dtype = u_ref.dtype

    # 1) Intra-chunk causal conv for all chunks of this super-block at once:
    #    a single batched-over-th MXU matmul with M = nc_sub * B rows.
    u3 = u_ref[...].reshape(th, nc_sub * B, Lb)          # rows ordered (chunk, batch)
    y_intra = jax.lax.dot_general(
        u3, tt_ref[...],
        dimension_numbers=(((2,), (1,)), ((0,), (0,))),
        preferred_element_type=jnp.float32)              # (th, nc_sub*B, Lb) f32

    cout = cout_ref[...]
    vin = vin_ref[...]
    lamlb = lamlb_ref[...]

    # 2) Cross-chunk state carry: thin (B,N2)@(N2,Lb) and (B,Lb)@(Lb,N2) matmuls.
    #    nc_sub is a small static constant; this loop is unrolled at trace time.
    for c in range(nc_sub):
        state = state_ref[...]                           # (th, B, N2) f32
        cross = jax.lax.dot_general(
            state.astype(mm_dtype), cout,
            dimension_numbers=(((2,), (1,)), ((0,), (0,))),
            preferred_element_type=jnp.float32)          # (th, B, Lb)
        y_ref[:, c, :, :] = (y_intra[:, c * B:(c + 1) * B, :] + cross).astype(y_ref.dtype)
        du = jax.lax.dot_general(
            u3[:, c * B:(c + 1) * B, :], vin,
            dimension_numbers=(((2,), (1,)), ((0,), (0,))),
            preferred_element_type=jnp.float32)          # (th, B, N2)
        state_ref[...] = state * lamlb[:, None, :] + du


def _pick_h_tile(H, vmem_budget, vmem_est):
    # Divisors of H usable as a tile (lamlb block needs th % 8 == 0 or th == H).
    cands = [d for d in range(H, 0, -1) if H % d == 0 and (d % 8 == 0 or d == H)]
    fits = [d for d in cands if vmem_est(d) <= vmem_budget] or [cands[-1]]
    multi = [d for d in fits if d <= H // 2]   # >= 2 "parallel" steps for v7x's 2 TCs
    return max(multi) if multi else max(fits)


def s4d_forward(u, log_dt, log_A_real, C_real, *,
                matmul_dtype=jnp.bfloat16, lb=None, nc_sub=None, th=None):
    """Pallas-backed equivalent of S4D.forward (executed path). Returns (y, None)."""
    B, H, L = u.shape
    N2 = log_A_real.shape[-1]
    f32 = jnp.float32

    # ---- chunking along L --------------------------------------------------
    Lb = min(L, 128) if lb is None else lb      # 128 -> lane-dense y stores at production L
    assert L % Lb == 0
    nc = L // Lb                                # total chunks
    if nc_sub is None:                          # chunks per grid step: target MXU M = B*nc_sub >= 256
        divs = [d for d in range(1, nc + 1) if nc % d == 0]
        good = [d for d in divs if B * d >= 256 and d <= 64]
        nc_sub = good[0] if good else max(d for d in divs if d <= 64)
    assert nc % nc_sub == 0
    nsteps = nc // nc_sub

    # ---- VMEM-derived tiling / limits ---------------------------------------
    mm_bytes = jnp.dtype(matmul_dtype).itemsize
    out_bytes = jnp.dtype(u.dtype).itemsize
    try:
        vmem_cap = int(pltpu.get_tpu_info().vmem_capacity_bytes)
    except Exception:
        vmem_cap = 64 * 1024 * 1024             # conservative (v7x per-core) fallback
    vmem_limit = max(32 << 20, min(vmem_cap, 128 << 20) - (16 << 20))

    def vmem_est(t):                            # rough per-step footprint for H-tile t
        params = 2 * t * (Lb * Lb + 2 * N2 * Lb) * mm_bytes + 2 * t * N2 * 4
        io = 2 * t * nc_sub * B * Lb * (mm_bytes + out_bytes)
        scratch = t * B * N2 * 4
        interm = t * nc_sub * B * Lb * 4 + 4 * t * B * (Lb + N2) * 4
        return params + io + scratch + interm

    if th is None:
        th = _pick_h_tile(H, 0.6 * vmem_limit, vmem_est)
    assert H % th == 0 and (th % 8 == 0 or th == H)

    # ---- tiny O(H*(N2*Lb + Lb^2)) parameter prep in XLA ---------------------
    dt = jnp.exp(log_dt.astype(f32))                        # (H,)
    A_real = -jnp.exp(log_A_real.astype(f32))               # (H, N2)
    dtA = A_real * dt[:, None]                              # (H, N2), <= 0 -> lam = exp(dtA) in (0, 1]
    ceff = C_real.astype(f32) * jnp.expm1(dtA) / A_real     # (H, N2)

    m = jnp.arange(Lb, dtype=f32)
    K = jnp.einsum('hn,hnm->hm', ceff, jnp.exp(dtA[:, :, None] * m))      # (H, Lb)
    lag = jnp.arange(Lb)[None, :] - jnp.arange(Lb)[:, None]               # p - q, (Lb, Lb)
    tt = jnp.where(lag >= 0, jnp.take(K, jnp.clip(lag, 0, Lb - 1), axis=1), 0.0)  # (H, Lb, Lb)
    cout = ceff[:, :, None] * jnp.exp(dtA[:, :, None] * (m + 1.0))        # (H, N2, Lb)
    vin = jnp.swapaxes(jnp.exp(dtA[:, :, None] * (Lb - 1.0 - m)), 1, 2)   # (H, Lb, N2)
    lamlb = jnp.exp(dtA * float(Lb))                                      # (H, N2), f32

    # ---- layout: (B, H, L) -> (H, nc, B, Lb); the chunk axis is dim 1 so the
    #      L grid axis never slices the minor (B, Lb) dims (no (8,128) issues).
    u_k = jnp.transpose(u, (1, 0, 2)).reshape(H, B, nc, Lb)
    u_k = jnp.transpose(u_k, (0, 2, 1, 3)).astype(matmul_dtype)           # (H, nc, B, Lb)

    y_k = pl.pallas_call(
        s4d_chunk_kernel,
        out_shape=jax.ShapeDtypeStruct((H, nc, B, Lb), u.dtype),
        grid_spec=pltpu.PrefetchScalarGridSpec(
            num_scalar_prefetch=0,
            grid=(H // th, nsteps),
            in_specs=[
                pl.BlockSpec((th, Lb, Lb), lambda hi, si: (hi, 0, 0)),
                pl.BlockSpec((th, N2, Lb), lambda hi, si: (hi, 0, 0)),
                pl.BlockSpec((th, Lb, N2), lambda hi, si: (hi, 0, 0)),
                pl.BlockSpec((th, N2), lambda hi, si: (hi, 0)),
                pl.BlockSpec((th, nc_sub, B, Lb), lambda hi, si: (hi, si, 0, 0)),
            ],
            out_specs=pl.BlockSpec((th, nc_sub, B, Lb), lambda hi, si: (hi, si, 0, 0)),
            scratch_shapes=[pltpu.VMEM((th, B, N2), jnp.float32)],
        ),
        compiler_params=pltpu.CompilerParams(
            dimension_semantics=("parallel", "arbitrary"),
            vmem_limit_bytes=int(vmem_limit)),
    )(tt.astype(matmul_dtype), cout.astype(matmul_dtype),
      vin.astype(matmul_dtype), lamlb, u_k)

    y = jnp.transpose(y_k, (2, 0, 1, 3)).reshape(B, H, L)
    return y, None


if __name__ == "__main__":
    # Small shapes consistent with the module: B=2, d_model(H)=32, N=64, L=16.
    B, H, N, L = 2, 32, 64, 16
    N2 = N // 2
    dt_min, dt_max = 0.001, 0.1

    key = jax.random.PRNGKey(0)
    k1, k2, k3 = jax.random.split(key, 3)
    log_dt = (jax.random.uniform(k1, (H,), dtype=jnp.float32)
              * (math.log(dt_max) - math.log(dt_min)) + math.log(dt_min))
    C_real = jax.random.normal(k2, (H, N2), dtype=jnp.float32)   # C[..., 0]; imag part unused on this path
    log_A_real = jnp.log(0.5 * jnp.ones((H, N2), dtype=jnp.float32))
    u = jax.random.normal(k3, (B, H, L), dtype=jnp.float32)

    # Pure-JAX reference reproducing the PyTorch FFT path exactly.
    dt = jnp.exp(log_dt)
    A_real = -jnp.exp(log_A_real)
    dtA_real = A_real * dt[:, None]
    Ceff = C_real * (jnp.exp(dtA_real) - 1.0) / A_real
    Kref = jnp.einsum('hn,hnl->hl', Ceff,
                      jnp.exp(dtA_real[:, :, None] * jnp.arange(L, dtype=jnp.float32)))
    y_ref = jnp.fft.irfft(jnp.fft.rfft(u, n=2 * L) * jnp.fft.rfft(Kref, n=2 * L),
                          n=2 * L)[..., :L]

    # 1) f32 MXU operands, single chunk (Lb = L): tight tolerance.
    y32, aux = s4d_forward(u, log_dt, log_A_real, C_real, matmul_dtype=jnp.float32)
    y32 = jax.block_until_ready(y32)
    assert aux is None and y32.shape == (B, H, L)
    e32 = float(jnp.max(jnp.abs(y32 - y_ref)))
    assert jnp.allclose(y32, y_ref, atol=1e-3, rtol=1e-3), f"f32 max_err={e32}"

    # 2) Exercise the chunked state-carry paths (carry across grid steps, and
    #    the in-kernel multi-chunk loop), still f32 / tight tolerance.
    for kwargs in ({"lb": 8, "nc_sub": 1},   # 2 grid steps along the 'arbitrary' chunk axis
                   {"lb": 8, "nc_sub": 2}):  # 2 chunks handled inside one grid step
        yc, _ = s4d_forward(u, log_dt, log_A_real, C_real,
                            matmul_dtype=jnp.float32, **kwargs)
        yc = jax.block_until_ready(yc)
        ec = float(jnp.max(jnp.abs(yc - y_ref)))
        assert jnp.allclose(yc, y_ref, atol=1e-3, rtol=1e-3), f"{kwargs} max_err={ec}"

    # 3) Default bf16 MXU operands (f32 accumulation): looser tolerance to
    #    cover bf16 operand rounding, as flagged in the perf review.
    ybf, _ = s4d_forward(u, log_dt, log_A_real, C_real)
    ybf = jax.block_until_ready(ybf)
    ebf = float(jnp.max(jnp.abs(ybf - y_ref)))
    assert jnp.allclose(ybf, y_ref, atol=5e-2, rtol=5e-2), f"bf16 max_err={ebf}"

    print("KERNEL_OK")
</pallas_src>

<mosaic_0001>
module attributes {stable_mosaic.version = 11 : i64} {
  func.func @s4d_chunk_kernel(%arg0: i32, %arg1: i32, %arg2: memref<16x16x16xf32, #tpu.memory_space<vmem>>, %arg3: memref<16x32x16xf32, #tpu.memory_space<vmem>>, %arg4: memref<16x16x32xf32, #tpu.memory_space<vmem>>, %arg5: memref<16x32xf32, #tpu.memory_space<vmem>>, %arg6: memref<16x1x2x16xf32, #tpu.memory_space<vmem>>, %arg7: memref<16x1x2x16xf32, #tpu.memory_space<vmem>>, %arg8: memref<16x2x32xf32, #tpu.memory_space<vmem>>) attributes {dimension_semantics = [#tpu.dimension_semantics<parallel>, #tpu.dimension_semantics<arbitrary>], iteration_bounds = array<i64: 2, 1>, scalar_prefetch = 0 : i64, scratch_operands = 1 : i64, tpu.core_type = #tpu.core_type<tc>, window_params = [{transform_indices = @transform_0, window_bounds = array<i64: 16, 16, 16>}, {transform_indices = @transform_1, window_bounds = array<i64: 16, 32, 16>}, {transform_indices = @transform_2, window_bounds = array<i64: 16, 16, 32>}, {transform_indices = @transform_3, window_bounds = array<i64: 16, 32>}, {transform_indices = @transform_4, window_bounds = array<i64: 16, 1, 2, 16>}, {transform_indices = @transform_5, window_bounds = array<i64: 16, 1, 2, 16>}]} {
    %c0_i32 = arith.constant 0 : i32
    %0 = arith.cmpi eq, %arg1, %c0_i32 : i32
    %1 = arith.extui %0 : i1 to i32
    %c0_i32_0 = arith.constant 0 : i32
    %2 = arith.cmpi ne, %1, %c0_i32_0 : i32
    scf.if %2 {
      %cst_27 = arith.constant 0.000000e+00 : f32
      %22 = vector.broadcast %cst_27 : f32 to vector<16x2x32xf32>
      %c0_28 = arith.constant 0 : index
      %c0_29 = arith.constant 0 : index
      %c0_30 = arith.constant 0 : index
      %23 = vector.load %arg8[%c0_28, %c0_29, %c0_30] : memref<16x2x32xf32, #tpu.memory_space<vmem>>, vector<16x2x32xf32>
      tpu.vector_store %arg8[%c0_28, %c0_29, %c0_30], %22 {strides = array<i32>} : memref<16x2x32xf32, #tpu.memory_space<vmem>>, vector<16x2x32xf32>,
    } else {
    }
    %c0 = arith.constant 0 : index
    %c0_1 = arith.constant 0 : index
    %c0_2 = arith.constant 0 : index
    %c0_3 = arith.constant 0 : index
    %3 = vector.load %arg6[%c0, %c0_1, %c0_2, %c0_3] : memref<16x1x2x16xf32, #tpu.memory_space<vmem>>, vector<16x1x2x16xf32>
    %4 = vector.shape_cast %3 : vector<16x1x2x16xf32> to vector<16x2x16xf32>
    %c0_4 = arith.constant 0 : index
    %c0_5 = arith.constant 0 : index
    %c0_6 = arith.constant 0 : index
    %5 = vector.load %arg2[%c0_4, %c0_5, %c0_6] : memref<16x16x16xf32, #tpu.memory_space<vmem>>, vector<16x16x16xf32>
    %cst = arith.constant dense<0.000000e+00> : vector<16x2x16xf32>
    %6 = tpu.matmul %4, %5, %cst {dimension_numbers = #tpu.dot_dimension_numbers<[2], [1], [1], [2], [0, 0, 0, 1, 1, 2], [0], [0]>} : vector<16x2x16xf32>, vector<16x16x16xf32>, vector<16x2x16xf32> -> vector<16x2x16xf32>
    %c0_7 = arith.constant 0 : index
    %c0_8 = arith.constant 0 : index
    %c0_9 = arith.constant 0 : index
    %7 = vector.load %arg3[%c0_7, %c0_8, %c0_9] : memref<16x32x16xf32, #tpu.memory_space<vmem>>, vector<16x32x16xf32>
    %c0_10 = arith.constant 0 : index
    %c0_11 = arith.constant 0 : index
    %c0_12 = arith.constant 0 : index
    %8 = vector.load %arg4[%c0_10, %c0_11, %c0_12] : memref<16x16x32xf32, #tpu.memory_space<vmem>>, vector<16x16x32xf32>
    %c0_13 = arith.constant 0 : index
    %c0_14 = arith.constant 0 : index
    %9 = vector.load %arg5[%c0_13, %c0_14] : memref<16x32xf32, #tpu.memory_space<vmem>>, vector<16x32xf32>
    %c0_15 = arith.constant 0 : index
    %c0_16 = arith.constant 0 : index
    %c0_17 = arith.constant 0 : index
    %10 = vector.load %arg8[%c0_15, %c0_16, %c0_17] : memref<16x2x32xf32, #tpu.memory_space<vmem>>, vector<16x2x32xf32>
    %cst_18 = arith.constant dense<0.000000e+00> : vector<16x2x16xf32>
    %11 = tpu.matmul %10, %7, %cst_18 {dimension_numbers = #tpu.dot_dimension_numbers<[2], [1], [1], [2], [0, 0, 0, 1, 1, 2], [0], [0]>} : vector<16x2x32xf32>, vector<16x32x16xf32>, vector<16x2x16xf32> -> vector<16x2x16xf32>
    %12 = arith.addf %6, %11 : vector<16x2x16xf32>
    %c0_19 = arith.constant 0 : index
    %c0_20 = arith.constant 0 : index
    %c0_21 = arith.constant 0 : index
    %c0_22 = arith.constant 0 : index
    %13 = vector.load %arg7[%c0_19, %c0_20, %c0_21, %c0_22] : memref<16x1x2x16xf32, #tpu.memory_space<vmem>>, vector<16x1x2x16xf32>
    %14 = vector.shape_cast %13 : vector<16x1x2x16xf32> to vector<16x2x16xf32>
    %15 = vector.shape_cast %12 : vector<16x2x16xf32> to vector<16x1x2x16xf32>
    tpu.vector_store %arg7[%c0_19, %c0_20, %c0_21, %c0_22], %15 {strides = array<i32>} : memref<16x1x2x16xf32, #tpu.memory_space<vmem>>, vector<16x1x2x16xf32>,
    %cst_23 = arith.constant dense<0.000000e+00> : vector<16x2x32xf32>
    %16 = tpu.matmul %4, %8, %cst_23 {dimension_numbers = #tpu.dot_dimension_numbers<[2], [1], [1], [2], [0, 0, 0, 1, 1, 2], [0], [0]>} : vector<16x2x16xf32>, vector<16x16x32xf32>, vector<16x2x32xf32> -> vector<16x2x32xf32>
    %17 = vector.shape_cast %9 : vector<16x32xf32> to vector<16x1x32xf32>
    %18 = vector.broadcast %17 : vector<16x1x32xf32> to vector<16x2x32xf32>
    %19 = arith.mulf %10, %18 : vector<16x2x32xf32>
    %20 = arith.addf %19, %16 : vector<16x2x32xf32>
    %c0_24 = arith.constant 0 : index
    %c0_25 = arith.constant 0 : index
    %c0_26 = arith.constant 0 : index
    %21 = vector.load %arg8[%c0_24, %c0_25, %c0_26] : memref<16x2x32xf32, #tpu.memory_space<vmem>>, vector<16x2x32xf32>
    tpu.vector_store %arg8[%c0_24, %c0_25, %c0_26], %20 {strides = array<i32>} : memref<16x2x32xf32, #tpu.memory_space<vmem>>, vector<16x2x32xf32>,
    return
  }
  func.func @transform_0(%arg0: i32, %arg1: i32) -> (i32, i32, i32) {
    %c0_i32 = arith.constant 0 : i32
    %c0_i32_0 = arith.constant 0 : i32
    %c0_i32_1 = arith.constant 0 : i32
    return %arg0, %c0_i32, %c0_i32_0 : i32, i32, i32
  }
  func.func @transform_1(%arg0: i32, %arg1: i32) -> (i32, i32, i32) {
    %c0_i32 = arith.constant 0 : i32
    %c0_i32_0 = arith.constant 0 : i32
    %c0_i32_1 = arith.constant 0 : i32
    return %arg0, %c0_i32, %c0_i32_0 : i32, i32, i32
  }
  func.func @transform_2(%arg0: i32, %arg1: i32) -> (i32, i32, i32) {
    %c0_i32 = arith.constant 0 : i32
    %c0_i32_0 = arith.constant 0 : i32
    %c0_i32_1 = arith.constant 0 : i32
    return %arg0, %c0_i32, %c0_i32_0 : i32, i32, i32
  }
  func.func @transform_3(%arg0: i32, %arg1: i32) -> (i32, i32) {
    %c0_i32 = arith.constant 0 : i32
    %c0_i32_0 = arith.constant 0 : i32
    return %arg0, %c0_i32 : i32, i32
  }
  func.func @transform_4(%arg0: i32, %arg1: i32) -> (i32, i32, i32, i32) {
    %c0_i32 = arith.constant 0 : i32
    %c0_i32_0 = arith.constant 0 : i32
    %c0_i32_1 = arith.constant 0 : i32
    return %arg0, %arg1, %c0_i32, %c0_i32_0 : i32, i32, i32, i32
  }
  func.func @transform_5(%arg0: i32, %arg1: i32) -> (i32, i32, i32, i32) {
    %c0_i32 = arith.constant 0 : i32
    %c0_i32_0 = arith.constant 0 : i32
    %c0_i32_1 = arith.constant 0 : i32
    return %arg0, %arg1, %c0_i32, %c0_i32_0 : i32, i32, i32, i32
  }
}

</mosaic_0001>

<bundles_post_ra>
// kernel: tpu_custom_call.1
= control target key start
LH: loop header
LB: loop body
LE: loop exit
PB: predicated region body
PF: predicated region fallthrough
CT: control target
= control target key end

     0   :  { %s5328_s18 = smov 0   ;;  %s5330_s19 = smov 0   ;;  %s6002_s0 = inlined_call_operand.vmem [shape: f32[32,16,16], index: 0, kind: input, shape index: {}]   ;;  %s6003_s1 = inlined_call_operand.vmem [shape: f32[32,32,16], index: 1, kind: input, shape index: {}]   ;;  %s6004_s2 = inlined_call_operand.vmem [shape: f32[32,16,32], index: 2, kind: input, shape index: {}]   ;;  %s6005_s3 = inlined_call_operand.vmem [shape: f32[32,32], index: 3, kind: input, shape index: {}]   ;;  %s6006_s4 = inlined_call_operand.vmem [shape: f32[32,1,2,16], index: 4, kind: input, shape index: {}]   ;;  %s6007_s5 = inlined_call_operand.vmem [shape: f32[32,1,2,16], index: 5, kind: output, shape index: {}]  }
   0x1   :  { %s5332_s20 = smov 0  }
   0x2 LB: > { %s27_s21 = sadd.s32 1, %s5288_s19  ;;  %p4373_p0 = scmp.ge.s32.totalorder %s5292_s20, 1  ;;  %s5292_s20 = sphi %s5332_s20, %s15_s20   ;;  %s5288_s19 = sphi %s5330_s19, %s6010_s19   ;;  %s5284_s18 = sphi %s5328_s18, %s6009_s18  }
   0x3   : > { %p29_p1 = scmp.ge.s32.totalorder %s27_s21, 2  ;;  %p254_p2 = scmp.lt.s32.totalorder %s5292_s20, 3 }
   0x5   : > { %s6012_s21 = smov (%p29_p1, %s27_s21), 0  ;;  %p255_p3 = pnand %p4373_p0, %p254_p2 }
   0x6   : > { %s4374_s22 = sshll.u32 (!%p255_p3), %s5284_s18, 4  ;;  %vm360_vm0 = vcmask (!%p255_p3), 254976   ;;  %v5294_v0 = vmov (!%p255_p3), 0.0|0.0   ;;  %v5295_v1 = vmov (!%p255_p3), 0.0   ;;  %vm5296_vm1 = vmmov (!%p255_p3), 0   ;;  %s4383_s14 = sshll.u32 (!%p255_p3), %s5284_s18, 1 }
   0x7   : > { %258 = sbr.rel (%p255_p3) target bundleno = 363 (0x16b), region = 40  ;;  %5018 = vmatprep.subr.bf16.mxu0 (!%p255_p3), %v5294_v0  ;;  %5024 = vmatprep.subr.bf16.mxu1 (!%p255_p3), %v5294_v0  ;;  %p5351_p4 = scmp.lt.s32.totalorder (!%p255_p3), %s4374_s22, 31  ;;  %361 = vst.msk [vmem:[#allocation2] sm:$0x3] (!%p255_p3), %vm360_vm0, %v5295_v1  ;;  %362 = vst.msk [vmem:[#allocation2 + $0x2] sm:$0x3] (!%p255_p3), %vm360_vm0, %v5295_v1 }
   0x8   : > { %363 = vst.msk [vmem:[#allocation2 + $0x4] sm:$0x3] (!%p255_p3), %vm360_vm0, %v5295_v1  ;;  %364 = vst.msk [vmem:[#allocation2 + $0x6] sm:$0x3] (!%p255_p3), %vm360_vm0, %v5295_v1  ;;  %4626 = vmatprep.mubr.msk.f32.mxu0 (!%p255_p3), %vm5296_vm1, %v5295_v1  ;;  %4637 = vmatprep.mubr.msk.f32.mxu1 (!%p255_p3), %vm5296_vm1, %v5295_v1  ;;  %vm539_vm2 = vcmask (!%p255_p3), 261120   ;;  %vm1708_vm3 = vcmask (!%p255_p3), 130048  }
   0x9   : > { %365 = vst.msk [vmem:[#allocation2 + $0x8] sm:$0x3] (!%p255_p3), %vm360_vm0, %v5295_v1  ;;  %366 = vst.msk [vmem:[#allocation2 + $0xa] sm:$0x3] (!%p255_p3), %vm360_vm0, %v5295_v1  ;;  %p333_p5 = scmp.lt.s32.totalorder (!%p255_p3), %s4383_s14, 3  ;;  %vm2877_vm4 = vcmask (!%p255_p3), 123904  }
   0xa   : > { %367 = vst.msk [vmem:[#allocation2 + $0xc] sm:$0x3] (!%p255_p3), %vm360_vm0, %v5295_v1  ;;  %368 = vst.msk [vmem:[#allocation2 + $0xe] sm:$0x3] (!%p255_p3), %vm360_vm0, %v5295_v1 }
   0xb   : > { %369 = vst.msk [vmem:[#allocation2 + $0x10] sm:$0x3] (!%p255_p3), %vm360_vm0, %v5295_v1  ;;  %370 = vst.msk [vmem:[#allocation2 + $0x12] sm:$0x3] (!%p255_p3), %vm360_vm0, %v5295_v1 }
   0xc   : > { %371 = vst.msk [vmem:[#allocation2 + $0x14] sm:$0x3] (!%p255_p3), %vm360_vm0, %v5295_v1  ;;  %372 = vst.msk [vmem:[#allocation2 + $0x16] sm:$0x3] (!%p255_p3), %vm360_vm0, %v5295_v1 }
   0xd   : > { %373 = vst.msk [vmem:[#allocation2 + $0x18] sm:$0x3] (!%p255_p3), %vm360_vm0, %v5295_v1  ;;  %374 = vst.msk [vmem:[#allocation2 + $0x1a] sm:$0x3] (!%p255_p3), %vm360_vm0, %v5295_v1 }
   0xe   : > { %375 = vst.msk [vmem:[#allocation2 + $0x1c] sm:$0x3] %vm360_vm0, %v5295_v1  ;;  %376 = vst.msk [vmem:[#allocation2 + $0x1e] sm:$0x3] %vm360_vm0, %v5295_v1  ;;  %s6014_s22 = smov (!%p5351_p4, %s4374_s22), 31  ;;  %s6016_s14 = smov (!%p333_p5, %s4383_s14), 3 }
   0xf   : > { %s4440_s24 = sshll.u32 %s6014_s22, 5  ;;  %v5415_v18 = vld [vmem:[#allocation2] sm:$0x3]  ;;  %v5418_v20 = vld [vmem:[#allocation2 + $0x2] sm:$0x3]  ;;  %s4439_s28 = sshll.u32 %s6014_s22, 4 }
  0x10   : > { %s5399_s27 = scalar_lea.vmem %s6003_s1, %s4440_s24  ;;  %v5439_v32 = vld [vmem:[#allocation2 + $0x4] sm:$0x3]  ;;  %v5442_v34 = vld [vmem:[#allocation2 + $0x6] sm:$0x3]  ;;  %v5463_v46 = vld [vmem:[#allocation2 + $0x8] sm:$0x3]  ;;  %s5575_s6 = scalar_lea.vmem %s6002_s0, %s4439_s28 }
  0x11   : > { %v425_v2 = vld [vmem:[%s5399_s27] sm:$0xff]  ;;  %v426_v3 = vld [vmem:[%s5399_s27 + $0x8] sm:$0xff]  ;;  %v427_v7 = vld [vmem:[%s5399_s27 + $0x10] sm:$0xff]  ;;  %s4386_s7 = sshll.u32 %s6014_s22, 1  ;;  %s5733_s13 = scalar_lea.vmem %s6004_s2, %s4439_s28 }
  0x12   : > { %v429_v4 = vld [vmem:[%s5399_s27 + $0x20] sm:$0xff]  ;;  %v5019_v5 = vpack.c.bf16 %v426_v3, %v425_v2  ;;  %v430_v6 = vld [vmem:[%s5399_s27 + $0x28] sm:$0xff]  ;;  %v428_v8 = vld [vmem:[%s5399_s27 + $0x18] sm:$0xff]  ;;  %s5602_s10 = scalar_lea.vmem %s6006_s4, %s4386_s7  ;;  %s5888_s17 = scalar_lea.vmem %s6007_s5, %s4386_s7 }
  0x13   : > { %v5025_v9 = vpack.c.bf16 %v430_v6, %v429_v4  ;;  %v431_v10 = vld [vmem:[%s5399_s27 + $0x30] sm:$0xff]  ;;  %v432_v11 = vld [vmem:[%s5399_s27 + $0x38] sm:$0xff]  ;;  %v5022_v12 = vpack.c.bf16 %v428_v8, %v427_v7  ;;  %v433_v14 = vld [vmem:[%s5399_s27 + $0x40] sm:$0xff]  ;;  %s4384_s18 = sshll.u32 %s6016_s14, 3 }
  0x14   : > { %5020 = vmatpush3.bf16.msra.mxu0 %v5019_v5  ;;  %v5028_v13 = vpack.c.bf16 %v432_v11, %v431_v10  ;;  %v434_v15 = vld [vmem:[%s5399_s27 + $0x48] sm:$0xff]  ;;  %v437_v16 = vld [vmem:[%s5399_s27 + $0x60] sm:$0xff]  ;;  %v435_v22 = vld [vmem:[%s5399_s27 + $0x50] sm:$0xff]  ;;  %s5901_s24 = scalar_lea.vmem %s6005_s3, %s4384_s18 }
  0x15   : > { %5026 = vmatpush3.bf16.msra.mxu1 %v5025_v9  ;;  %5021 = vmatprep.subr.bf16.mxu0 %v5294_v0  ;;  %v438_v17 = vld [vmem:[%s5399_s27 + $0x68] sm:$0xff]  ;;  %v5031_v19 = vpack.c.bf16 %v434_v15, %v433_v14  ;;  %v436_v23 = vld [vmem:[%s5399_s27 + $0x58] sm:$0xff]  ;;  %v439_v24 = vld [vmem:[%s5399_s27 + $0x70] sm:$0xff] }
  0x16   : > { %5027 = vmatprep.subr.bf16.mxu1 %v5294_v0  ;;  %v5037_v21 = vpack.c.bf16 %v438_v17, %v437_v16  ;;  %v440_v25 = vld [vmem:[%s5399_s27 + $0x78] sm:$0xff]  ;;  %v5034_v26 = vpack.c.bf16 %v436_v23, %v435_v22  ;;  %v441_v28 = vld [vmem:[%s5399_s27 + $0x80] sm:$0xff]  ;;  %v442_v29 = vld [vmem:[%s5399_s27 + $0x88] sm:$0xff] }
  0x17   : > { %v5040_v27 = vpack.c.bf16 %v440_v25, %v439_v24  ;;  %v445_v30 = vld [vmem:[%s5399_s27 + $0xa0] sm:$0xff]  ;;  %v446_v31 = vld [vmem:[%s5399_s27 + $0xa8] sm:$0xff]  ;;  %v5043_v33 = vpack.c.bf16 %v442_v29, %v441_v28  ;;  %v443_v36 = vld [vmem:[%s5399_s27 + $0x90] sm:$0xff] }
  0x18   : > { %5023 = vmatpush3.bf16.msra.mxu0 %v5022_v12  ;;  %v5049_v35 = vpack.c.bf16 %v446_v31, %v445_v30  ;;  %v444_v37 = vld [vmem:[%s5399_s27 + $0x98] sm:$0xff]  ;;  %v447_v38 = vld [vmem:[%s5399_s27 + $0xb0] sm:$0xff]  ;;  %v449_v42 = vld [vmem:[%s5399_s27 + $0xc0] sm:$0xff] }
  0x19   : > { %5029 = vmatpush3.bf16.msra.mxu1 %v5028_v13  ;;  %5030 = vmatprep.subr.bf16.mxu0 %v5294_v0  ;;  %v448_v39 = vld [vmem:[%s5399_s27 + $0xb8] sm:$0xff]  ;;  %v5046_v40 = vpack.c.bf16 %v444_v37, %v443_v36  ;;  %v450_v43 = vld [vmem:[%s5399_s27 + $0xc8] sm:$0xff]  ;;  %v453_v44 = vld [vmem:[%s5399_s27 + $0xe0] sm:$0xff] }
  0x1a   : > { %5036 = vmatprep.subr.bf16.mxu1 %v5294_v0  ;;  %v5052_v41 = vpack.c.bf16 %v448_v39, %v447_v38  ;;  %v454_v45 = vld [vmem:[%s5399_s27 + $0xe8] sm:$0xff]  ;;  %v5055_v47 = vpack.c.bf16 %v450_v43, %v449_v42  ;;  %v451_v50 = vld [vmem:[%s5399_s27 + $0xd0] sm:$0xff]  ;;  %v452_v51 = vld [vmem:[%s5399_s27 + $0xd8] sm:$0xff] }
  0x1b   : > { %4627 = vmatmul.mubr.msk.f32.vlgmr.msra.gmra.mrb[0].mxu0 %vm539_vm2, %v5415_v18  ;;  %v5466_v48 = vld [vmem:[#allocation2 + $0xa] sm:$0x3]  ;;  %v5061_v49 = vpack.c.bf16 %v454_v45, %v453_v44  ;;  %v455_v52 = vld [vmem:[%s5399_s27 + $0xf0] sm:$0xff]  ;;  %v456_v53 = vld [vmem:[%s5399_s27 + $0xf8] sm:$0xff]  ;;  %v5058_v54 = vpack.c.bf16 %v452_v51, %v451_v50 }
  0x1c   : > { %4638 = vmatmul.mubr.msk.f32.vlgmr.msra.gmra.mrb[0].mxu1 %vm539_vm2, %v5418_v20  ;;  %5032 = vmatpush3.bf16.msra.mxu0 %v5031_v19  ;;  %v5064_v55 = vpack.c.bf16 %v456_v53, %v455_v52  ;;  %v457_v56 = vld [vmem:[%s5399_s27 + $0x100] sm:$0xff]  ;;  %v458_v57 = vld [vmem:[%s5399_s27 + $0x108] sm:$0xff]  ;;  %v459_v2 = vld [vmem:[%s5399_s27 + $0x110] sm:$0xff] }
  0x1d   : > { %5038 = vmatpush3.bf16.msra.mxu1 %v5037_v21  ;;  %5033 = vmatprep.subr.bf16.mxu0 %v5294_v0  ;;  %v461_v58 = vld [vmem:[%s5399_s27 + $0x120] sm:$0xff]  ;;  %v462_v59 = vld [vmem:[%s5399_s27 + $0x128] sm:$0xff]  ;;  %v5067_v61 = vpack.c.bf16 %v458_v57, %v457_v56  ;;  %v460_v3 = vld [vmem:[%s5399_s27 + $0x118] sm:$0xff] }
  0x1e   : > { %5039 = vmatprep.subr.bf16.mxu1 %v5294_v0  ;;  %4648 = vmatprep.mubr.msk.f32.mxu0 %vm5296_vm1, %v5295_v1  ;;  %v5487_v60 = vld [vmem:[#allocation2 + $0xc] sm:$0x3]  ;;  %v5490_v62 = vld [vmem:[#allocation2 + $0xe] sm:$0x3]  ;;  %v5073_v63 = vpack.c.bf16 %v462_v59, %v461_v58  ;;  %v463_v4 = vld [vmem:[%s5399_s27 + $0x130] sm:$0xff]  ;;  %v5070_v6 = vpack.c.bf16 %v460_v3, %v459_v2 }
  0x1f   : > { %4659 = vmatprep.mubr.msk.f32.mxu1 %vm5296_vm1, %v5295_v1  ;;  %v464_v5 = vld [vmem:[%s5399_s27 + $0x138] sm:$0xff]  ;;  %v465_v8 = vld [vmem:[%s5399_s27 + $0x140] sm:$0xff]  ;;  %v466_v9 = vld [vmem:[%s5399_s27 + $0x148] sm:$0xff] }
  0x20   : > { %5035 = vmatpush3.bf16.msra.mxu0 %v5034_v26  ;;  %v5076_v7 = vpack.c.bf16 %v464_v5, %v463_v4  ;;  %v469_v10 = vld [vmem:[%s5399_s27 + $0x160] sm:$0xff]  ;;  %v470_v11 = vld [vmem:[%s5399_s27 + $0x168] sm:$0xff]  ;;  %v5511_v12 = vld [vmem:[#allocation2 + $0x10] sm:$0x3]  ;;  %v5079_v13 = vpack.c.bf16 %v466_v9, %v465_v8 }
  0x21   : > { %5041 = vmatpush3.bf16.msra.mxu1 %v5040_v27  ;;  %5042 = vmatprep.subr.bf16.mxu0 %v5294_v0  ;;  %v5514_v14 = vld [vmem:[#allocation2 + $0x12] sm:$0x3]  ;;  %v5085_v15 = vpack.c.bf16 %v470_v11, %v469_v10  ;;  %v468_v17 = vld [vmem:[%s5399_s27 + $0x158] sm:$0xff]  ;;  %v473_v24 = vld [vmem:[%s5399_s27 + $0x180] sm:$0xff] }
  0x22   : > { %5048 = vmatprep.subr.bf16.mxu1 %v5294_v0  ;;  %v467_v16 = vld [vmem:[%s5399_s27 + $0x150] sm:$0xff]  ;;  %v472_v21 = vld [vmem:[%s5399_s27 + $0x178] sm:$0xff]  ;;  %v474_v25 = vld [vmem:[%s5399_s27 + $0x188] sm:$0xff] }
  0x23   : > { %4649 = vmatmul.mubr.msk.f32.vlgmr.msra.gmra.mrb[2].mxu0 %vm539_vm2, %v5439_v32  ;;  %v471_v19 = vld [vmem:[%s5399_s27 + $0x170] sm:$0xff]  ;;  %v5082_v22 = vpack.c.bf16 %v468_v17, %v467_v16  ;;  %v477_v26 = vld [vmem:[%s5399_s27 + $0x1a0] sm:$0xff]  ;;  %v478_v27 = vld [vmem:[%s5399_s27 + $0x1a8] sm:$0xff]  ;;  %v5091_v29 = vpack.c.bf16 %v474_v25, %v473_v24 }
  0x24   : > { %4660 = vmatmul.mubr.msk.f32.vlgmr.msra.gmra.mrb[2].mxu1 %vm539_vm2, %v5442_v34  ;;  %5044 = vmatpush3.bf16.msra.mxu0 %v5043_v33  ;;  %v5088_v23 = vpack.c.bf16 %v472_v21, %v471_v19  ;;  %v5535_v28 = vld [vmem:[#allocation2 + $0x14] sm:$0x3]  ;;  %v5538_v30 = vld [vmem:[#allocation2 + $0x16] sm:$0x3]  ;;  %v5097_v31 = vpack.c.bf16 %v478_v27, %v477_v26  ;;  %v480_v37 = vld [vmem:[%s5399_s27 + $0x1b8] sm:$0xff] }
  0x25   : > { %5050 = vmatpush3.bf16.msra.mxu1 %v5049_v35  ;;  %5045 = vmatprep.subr.bf16.mxu0 %v5294_v0  ;;  %v475_v33 = vld [vmem:[%s5399_s27 + $0x190] sm:$0xff]  ;;  %v476_v35 = vld [vmem:[%s5399_s27 + $0x198] sm:$0xff]  ;;  %v485_v42 = vld [vmem:[%s5399_s27 + $0x1e0] sm:$0xff] }
  0x26   : > { %5051 = vmatprep.subr.bf16.mxu1 %v5294_v0  ;;  %4670 = vmatprep.mubr.msk.f32.mxu0 %vm5296_vm1, %v5295_v1  ;;  %v479_v36 = vld [vmem:[%s5399_s27 + $0x1b0] sm:$0xff]  ;;  %v5094_v38 = vpack.c.bf16 %v476_v35, %v475_v33  ;;  %v486_v43 = vld [vmem:[%s5399_s27 + $0x1e8] sm:$0xff]  ;;  %v5560_v44 = vld [vmem:[#allocation2 + $0x18] sm:$0x3] }
  0x27   : > { %4681 = vmatprep.mubr.msk.f32.mxu1 %vm5296_vm1, %v5295_v1  ;;  %v5100_v39 = vpack.c.bf16 %v480_v37, %v479_v36  ;;  %v483_v50 = vld [vmem:[%s5399_s27 + $0x1d0] sm:$0xff]  ;;  %v484_v51 = vld [vmem:[%s5399_s27 + $0x1d8] sm:$0xff]  ;;  %v393_v56 = vld [vmem:[%s5575_s6] sm:$0xff] }
  0x28   : > { %5047 = vmatpush3.bf16.msra.mxu0 %v5046_v40  ;;  %v481_v40 = vld [vmem:[%s5399_s27 + $0x1c0] sm:$0xff]  ;;  %v487_v52 = vld [vmem:[%s5399_s27 + $0x1f0] sm:$0xff]  ;;  %v488_v53 = vld [vmem:[%s5399_s27 + $0x1f8] sm:$0xff] }
  0x29   : > { %5053 = vmatpush3.bf16.msra.mxu1 %v5052_v41  ;;  %5054 = vmatprep.subr.bf16.mxu0 %v5294_v0  ;;  %v482_v41 = vld [vmem:[%s5399_s27 + $0x1c8] sm:$0xff]  ;;  %v395_v58 = vld [vmem:[%s5575_s6 + $0x10] sm:$0xff]  ;;  %v396_v59 = vld [vmem:[%s5575_s6 + $0x18] sm:$0xff] }
  0x2a   : > { %5060 = vmatprep.subr.bf16.mxu1 %v5294_v0  ;;  %v5103_v45 = vpack.c.bf16 %v482_v41, %v481_v40  ;;  %v394_v57 = vld [vmem:[%s5575_s6 + $0x8] sm:$0xff]  ;;  %v5594_v2 = vld [vmem:[#allocation2 + $0x1e] sm:$0x3]  ;;  %v5118_v3 = vpack.c.bf16 %v396_v59, %v395_v58  ;;  %v397_v4 = vld [vmem:[%s5575_s6 + $0x20] sm:$0xff] }
  0x2b   : > { %4671 = vmatmul.mubr.msk.f32.vlgmr.msra.gmra.mrb[4].mxu0 %vm539_vm2, %v5463_v46  ;;  %v398_v5 = vld [vmem:[%s5575_s6 + $0x28] sm:$0xff]  ;;  %v5614_v8 = vld [vmem:[%s5602_s10] sm:$0x3]  ;;  %v5619_v10 = vld [vmem:[%s5602_s10 + $0x2] sm:$0x3] }
  0x2c   : > { %4682 = vmatmul.mubr.msk.f32.vlgmr.msra.gmra.mrb[4].mxu1 %vm539_vm2, %v5466_v48  ;;  %5056 = vmatpush3.bf16.msra.mxu0 %v5055_v47  ;;  %v5563_v47 = vld [vmem:[#allocation2 + $0x1a] sm:$0x3]  ;;  %v5121_v9 = vpack.c.bf16 %v398_v5, %v397_v4  ;;  %v403_v16 = vld [vmem:[%s5575_s6 + $0x50] sm:$0xff]  ;;  %v5634_v19 = vld [vmem:[%s5602_s10 + $0x4] sm:$0x3] }
  0x2d   : > { %5062 = vmatpush3.bf16.msra.mxu1 %v5061_v49  ;;  %5057 = vmatprep.subr.bf16.mxu0 %v5294_v0  ;;  %v5109_v49 = vpack.c.bf16 %v486_v43, %v485_v42  ;;  %v404_v17 = vld [vmem:[%s5575_s6 + $0x58] sm:$0xff]  ;;  %v405_v24 = vld [vmem:[%s5575_s6 + $0x60] sm:$0xff]  ;;  %v406_v25 = vld [vmem:[%s5575_s6 + $0x68] sm:$0xff] }
  0x2e   : > { %5063 = vmatprep.subr.bf16.mxu1 %v5294_v0  ;;  %4692 = vmatprep.mubr.msk.f32.mxu0 %vm5296_vm1, %v5295_v1  ;;  %v407_v26 = vld [vmem:[%s5575_s6 + $0x70] sm:$0xff]  ;;  %v408_v27 = vld [vmem:[%s5575_s6 + $0x78] sm:$0xff]  ;;  %v5659_v33 = vld [vmem:[%s5602_s10 + $0xa] sm:$0x3] }
  0x2f   : > { %4703 = vmatprep.mubr.msk.f32.mxu1 %vm5296_vm1, %v5295_v1  ;;  %v5136_v35 = vpack.c.bf16 %v408_v27, %v407_v26  ;;  %v409_v36 = vld [vmem:[%s5575_s6 + $0x80] sm:$0xff]  ;;  %v410_v37 = vld [vmem:[%s5575_s6 + $0x88] sm:$0xff]  ;;  %v419_v58 = vld [vmem:[%s5575_s6 + $0xd0] sm:$0xff] }
  0x30   : > { %5059 = vmatpush3.bf16.msra.mxu0 %v5058_v54  ;;  %v5106_v54 = vpack.c.bf16 %v484_v51, %v483_v50  ;;  %v5674_v40 = vld [vmem:[%s5602_s10 + $0xc] sm:$0x3]  ;;  %v5139_v41 = vpack.c.bf16 %v410_v37, %v409_v36  ;;  %v5679_v42 = vld [vmem:[%s5602_s10 + $0xe] sm:$0x3]  ;;  %v415_v50 = vld [vmem:[%s5575_s6 + $0xb0] sm:$0xff] }
  0x31   : > { %5065 = vmatpush3.bf16.msra.mxu1 %v5064_v55  ;;  %5066 = vmatprep.subr.bf16.mxu0 %v5294_v0  ;;  %v5112_v55 = vpack.c.bf16 %v488_v53, %v487_v52  ;;  %v416_v51 = vld [vmem:[%s5575_s6 + $0xb8] sm:$0xff]  ;;  %v5694_v52 = vld [vmem:[%s5602_s10 + $0x10] sm:$0x3]  ;;  %v5719_v4 = vld [vmem:[%s5602_s10 + $0x16] sm:$0x3] }
  0x32   : > { %5072 = vmatprep.subr.bf16.mxu1 %v5294_v0  ;;  %v420_v59 = vld [vmem:[%s5575_s6 + $0xd8] sm:$0xff]  ;;  %v493_v36 = vld [vmem:[%s5733_s13 + $0x20] sm:$0xff]  ;;  %v494_v37 = vld [vmem:[%s5733_s13 + $0x28] sm:$0xff] }
  0x33   : > { %4693 = vmatmul.mubr.msk.f32.vlgmr.msra.gmra.mrb[6].mxu0 %vm539_vm2, %v5487_v60  ;;  %v5154_v5 = vpack.c.bf16 %v420_v59, %v419_v58  ;;  %v5761_v26 = vld [vmem:[%s5602_s10 + $0x1c] sm:$0x3] }
  0x34   : > { %4704 = vmatmul.mubr.msk.f32.vlgmr.msra.gmra.mrb[6].mxu1 %vm539_vm2, %v5490_v62  ;;  %5068 = vmatpush3.bf16.msra.mxu0 %v5067_v61  ;;  %v5592_v61 = vld [vmem:[#allocation2 + $0x1c] sm:$0x3] }
  0x35   : > { %5074 = vmatpush3.bf16.msra.mxu1 %v5073_v63  ;;  %5069 = vmatprep.subr.bf16.mxu0 %v5294_v0  ;;  %v5115_v63 = vpack.c.bf16 %v394_v57, %v393_v56  ;;  %v417_v56 = vld [vmem:[%s5575_s6 + $0xc0] sm:$0xff]  ;;  %v418_v57 = vld [vmem:[%s5575_s6 + $0xc8] sm:$0xff] }
  0x36   : > { %5075 = vmatprep.subr.bf16.mxu1 %v5294_v0  ;;  %4714 = vmatprep.mubr.msk.f32.mxu0 %vm5296_vm1, %v5295_v1 }
  0x37   : > { %4725 = vmatprep.mubr.msk.f32.mxu1 %vm5296_vm1, %v5295_v1 }
  0x38   : > { %5071 = vmatpush3.bf16.msra.mxu0 %v5070_v6  ;;  %v399_v6 = vld [vmem:[%s5575_s6 + $0x30] sm:$0xff] }
  0x39   : > { %5077 = vmatpush3.bf16.msra.mxu1 %v5076_v7  ;;  %5078 = vmatprep.subr.bf16.mxu0 %v5294_v0  ;;  %v400_v7 = vld [vmem:[%s5575_s6 + $0x38] sm:$0xff] }
  0x3a   : > { %5084 = vmatprep.subr.bf16.mxu1 %v5294_v0  ;;  %v5124_v11 = vpack.c.bf16 %v400_v7, %v399_v6  ;;  %v421_v6 = vld [vmem:[%s5575_s6 + $0xe0] sm:$0xff]  ;;  %v422_v7 = vld [vmem:[%s5575_s6 + $0xe8] sm:$0xff] }
  0x3b   : > { %4715 = vmatmul.mubr.msk.f32.vlgmr.msra.gmra.mrb[8].mxu0 %vm539_vm2, %v5511_v12 }
  0x3c   : > { %4726 = vmatmul.mubr.msk.f32.vlgmr.msra.gmra.mrb[8].mxu1 %vm539_vm2, %v5514_v14  ;;  %5080 = vmatpush3.bf16.msra.mxu0 %v5079_v13  ;;  %v401_v13 = vld [vmem:[%s5575_s6 + $0x40] sm:$0xff] }
  0x3d   : > { %5086 = vmatpush3.bf16.msra.mxu1 %v5085_v15  ;;  %5081 = vmatprep.subr.bf16.mxu0 %v5294_v0  ;;  %v402_v15 = vld [vmem:[%s5575_s6 + $0x48] sm:$0xff] }
  0x3e   : > { %5087 = vmatprep.subr.bf16.mxu1 %v5294_v0  ;;  %4736 = vmatprep.mubr.msk.f32.mxu0 %vm5296_vm1, %v5295_v1  ;;  %v5127_v21 = vpack.c.bf16 %v402_v15, %v401_v13  ;;  %v5741_v13 = vld [vmem:[%s5602_s10 + $0x18] sm:$0x3]  ;;  %v5157_v15 = vpack.c.bf16 %v422_v7, %v421_v6 }
  0x3f   : > { %4747 = vmatprep.mubr.msk.f32.mxu1 %vm5296_vm1, %v5295_v1 }
  0x40   : > { %5083 = vmatpush3.bf16.msra.mxu0 %v5082_v22  ;;  %v5639_v22 = vld [vmem:[%s5602_s10 + $0x6] sm:$0x3] }
  0x41   : > { %5089 = vmatpush3.bf16.msra.mxu1 %v5088_v23  ;;  %5090 = vmatprep.subr.bf16.mxu0 %v5294_v0  ;;  %v5130_v23 = vpack.c.bf16 %v404_v17, %v403_v16  ;;  %v5746_v16 = vld [vmem:[%s5602_s10 + $0x1a] sm:$0x3] }
  0x42   : > { %5096 = vmatprep.subr.bf16.mxu1 %v5294_v0 }
  0x43   : > { %4737 = vmatmul.mubr.msk.f32.vlgmr.msra.gmra.mrb[10].mxu0 %vm539_vm2, %v5535_v28 }
  0x44   : > { %4748 = vmatmul.mubr.msk.f32.vlgmr.msra.gmra.mrb[10].mxu1 %vm539_vm2, %v5538_v30  ;;  %5092 = vmatpush3.bf16.msra.mxu0 %v5091_v29  ;;  %v5654_v29 = vld [vmem:[%s5602_s10 + $0x8] sm:$0x3] }
  0x45   : > { %5098 = vmatpush3.bf16.msra.mxu1 %v5097_v31  ;;  %5093 = vmatprep.subr.bf16.mxu0 %v5294_v0  ;;  %v5133_v31 = vpack.c.bf16 %v406_v25, %v405_v24  ;;  %v491_v24 = vld [vmem:[%s5733_s13 + $0x10] sm:$0xff]  ;;  %v492_v25 = vld [vmem:[%s5733_s13 + $0x18] sm:$0xff] }
  0x46   : > { %5099 = vmatprep.subr.bf16.mxu1 %v5294_v0  ;;  %4758 = vmatprep.mubr.msk.f32.mxu0 %vm5296_vm1, %v5295_v1 }
  0x47   : > { %4769 = vmatprep.mubr.msk.f32.mxu1 %vm5296_vm1, %v5295_v1 }
  0x48   : > { %5095 = vmatpush3.bf16.msra.mxu0 %v5094_v38  ;;  %v411_v38 = vld [vmem:[%s5575_s6 + $0x90] sm:$0xff] }
  0x49   : > { %5101 = vmatpush3.bf16.msra.mxu1 %v5100_v39  ;;  %5102 = vmatprep.subr.bf16.mxu0 %v5294_v0  ;;  %v412_v39 = vld [vmem:[%s5575_s6 + $0x98] sm:$0xff] }
  0x4a   : > { %5108 = vmatprep.subr.bf16.mxu1 %v5294_v0  ;;  %v5142_v43 = vpack.c.bf16 %v412_v39, %v411_v38  ;;  %v495_v38 = vld [vmem:[%s5733_s13 + $0x30] sm:$0xff]  ;;  %v496_v39 = vld [vmem:[%s5733_s13 + $0x38] sm:$0xff] }
  0x4b   : > { %4759 = vmatmul.mubr.msk.f32.vlgmr.msra.gmra.mrb[12].mxu0 %vm539_vm2, %v5560_v44 }
  0x4c   : > { %4770 = vmatmul.mubr.msk.f32.vlgmr.msra.gmra.mrb[12].mxu1 %vm539_vm2, %v5563_v47  ;;  %5104 = vmatpush3.bf16.msra.mxu0 %v5103_v45  ;;  %v413_v45 = vld [vmem:[%s5575_s6 + $0xa0] sm:$0xff] }
  0x4d   : > { %5110 = vmatpush3.bf16.msra.mxu1 %v5109_v49  ;;  %5105 = vmatprep.subr.bf16.mxu0 %v5294_v0  ;;  %v414_v49 = vld [vmem:[%s5575_s6 + $0xa8] sm:$0xff] }
  0x4e   : > { %5111 = vmatprep.subr.bf16.mxu1 %v5294_v0  ;;  %4780 = vmatprep.mubr.msk.f32.mxu0 %vm5296_vm1, %v5295_v1  ;;  %v5145_v53 = vpack.c.bf16 %v414_v49, %v413_v45  ;;  %v497_v45 = vld [vmem:[%s5733_s13 + $0x40] sm:$0xff]  ;;  %v498_v49 = vld [vmem:[%s5733_s13 + $0x48] sm:$0xff] }
  0x4f   : > { %4791 = vmatprep.mubr.msk.f32.mxu1 %vm5296_vm1, %v5295_v1 }
  0x50   : > { %5107 = vmatpush3.bf16.msra.mxu0 %v5106_v54  ;;  %v5699_v54 = vld [vmem:[%s5602_s10 + $0x12] sm:$0x3] }
  0x51   : > { %5113 = vmatpush3.bf16.msra.mxu1 %v5112_v55  ;;  %5114 = vmatprep.subr.bf16.mxu0 %v5294_v0  ;;  %v5148_v55 = vpack.c.bf16 %v416_v51, %v415_v50  ;;  %v499_v50 = vld [vmem:[%s5733_s13 + $0x50] sm:$0xff]  ;;  %v500_v51 = vld [vmem:[%s5733_s13 + $0x58] sm:$0xff] }
  0x52   : > { %5117 = vmatprep.subr.bf16.mxu1 %v5294_v0 }
  0x53   : > { %4781 = vmatmul.mubr.msk.f32.vlgmr.msra.gmra.mrb[14].mxu0 %vm539_vm2, %v5592_v61 }
  0x54   : > { %4792 = vmatmul.mubr.msk.f32.vlgmr.msra.gmra.mrb[14].mxu1 %vm539_vm2, %v5594_v2  ;;  %5116 = vmatpush3.bf16.msra.mxu0 %v5115_v63  ;;  %v5714_v63 = vld [vmem:[%s5602_s10 + $0x14] sm:$0x3] }
  0x55   : > { %5119 = vmatpush3.bf16.msra.mxu1 %v5118_v3  ;;  %4798 = vmatprep.mubr.msk.f32.mxu0 %vm5296_vm1, %v5295_v1  ;;  %v5151_v3 = vpack.c.bf16 %v418_v57, %v417_v56  ;;  %v501_v56 = vld [vmem:[%s5733_s13 + $0x60] sm:$0xff]  ;;  %v502_v57 = vld [vmem:[%s5733_s13 + $0x68] sm:$0xff] }
  0x56   : > { %4805 = vmatprep.mubr.msk.f32.mxu1 %vm5296_vm1, %v5295_v1  ;;  %5120 = vmatprep.subr.bf16.mxu0 %v5294_v0  ;;  %v5181_v58 = vpack.c.bf16 %v502_v57, %v501_v56  ;;  %v521_v56 = vld [vmem:[%s5901_s24] sm:$0xff] }
  0x57   : > { %4799 = vmatmul.mubr.msk.f32.vlgmr.msra.gmra.mrb[0].mxu0 %vm1708_vm3, %v5614_v8  ;;  %5123 = vmatprep.subr.bf16.mxu1 %v5294_v0 }
  0x58   : > { %4806 = vmatmul.mubr.msk.f32.vlgmr.msra.gmra.mrb[0].mxu1 %vm1708_vm3, %v5619_v10  ;;  %5122 = vmatpush3.bf16.msra.mxu0 %v5121_v9  ;;  %v423_v9 = vld [vmem:[%s5575_s6 + $0xf0] sm:$0xff] }
  0x59   : > { %5125 = vmatpush3.bf16.msra.mxu1 %v5124_v11  ;;  %4812 = vmatprep.mubr.msk.f32.mxu0 %vm5296_vm1, %v5295_v1  ;;  %v424_v11 = vld [vmem:[%s5575_s6 + $0xf8] sm:$0xff] }
  0x5a   : > { %4819 = vmatprep.mubr.msk.f32.mxu1 %vm5296_vm1, %v5295_v1  ;;  %5126 = vmatprep.subr.bf16.mxu0 %v5294_v0  ;;  %v5160_v17 = vpack.c.bf16 %v424_v11, %v423_v9  ;;  %v509_v9 = vld [vmem:[%s5733_s13 + $0xa0] sm:$0xff]  ;;  %v510_v11 = vld [vmem:[%s5733_s13 + $0xa8] sm:$0xff] }
  0x5b   : > { %4813 = vmatmul.mubr.msk.f32.vlgmr.msra.gmra.mrb[2].mxu0 %vm1708_vm3, %v5634_v19  ;;  %5129 = vmatprep.subr.bf16.mxu1 %v5294_v0 }
  0x5c   : > { %4820 = vmatmul.mubr.msk.f32.vlgmr.msra.gmra.mrb[2].mxu1 %vm1708_vm3, %v5639_v22  ;;  %5128 = vmatpush3.bf16.msra.mxu0 %v5127_v21  ;;  %v489_v21 = vld [vmem:[%s5733_s13] sm:$0xff] }
  0x5d   : > { %5131 = vmatpush3.bf16.msra.mxu1 %v5130_v23  ;;  %4826 = vmatprep.mubr.msk.f32.mxu0 %vm5296_vm1, %v5295_v1  ;;  %v490_v23 = vld [vmem:[%s5733_s13 + $0x8] sm:$0xff] }
  0x5e   : > { %4833 = vmatprep.mubr.msk.f32.mxu1 %vm5296_vm1, %v5295_v1  ;;  %5132 = vmatprep.subr.bf16.mxu0 %v5294_v0  ;;  %v5163_v27 = vpack.c.bf16 %v490_v23, %v489_v21  ;;  %v513_v21 = vld [vmem:[%s5733_s13 + $0xc0] sm:$0xff]  ;;  %v514_v23 = vld [vmem:[%s5733_s13 + $0xc8] sm:$0xff] }
  0x5f   : > { %4827 = vmatmul.mubr.msk.f32.vlgmr.msra.gmra.mrb[4].mxu0 %vm1708_vm3, %v5654_v29  ;;  %5135 = vmatprep.subr.bf16.mxu1 %v5294_v0 }
  0x60   : > { %4834 = vmatmul.mubr.msk.f32.vlgmr.msra.gmra.mrb[4].mxu1 %vm1708_vm3, %v5659_v33  ;;  %5134 = vmatpush3.bf16.msra.mxu0 %v5133_v31  ;;  %v5766_v31 = vld [vmem:[%s5602_s10 + $0x1e] sm:$0x3] }
  0x61   : > { %5137 = vmatpush3.bf16.msra.mxu1 %v5136_v35  ;;  %4840 = vmatprep.mubr.msk.f32.mxu0 %vm5296_vm1, %v5295_v1  ;;  %v5166_v35 = vpack.c.bf16 %v492_v25, %v491_v24  ;;  %v5199_v24 = vpack.c.bf16 %v514_v23, %v513_v21 }
  0x62   : > { %4847 = vmatprep.mubr.msk.f32.mxu1 %vm5296_vm1, %v5295_v1  ;;  %5138 = vmatprep.subr.bf16.mxu0 %v5294_v0 }
  0x63   : > { %4841 = vmatmul.mubr.msk.f32.vlgmr.msra.gmra.mrb[6].mxu0 %vm1708_vm3, %v5674_v40  ;;  %5141 = vmatprep.subr.bf16.mxu1 %v5294_v0 }
  0x64   : > { %4848 = vmatmul.mubr.msk.f32.vlgmr.msra.gmra.mrb[6].mxu1 %vm1708_vm3, %v5679_v42  ;;  %5140 = vmatpush3.bf16.msra.mxu0 %v5139_v41  ;;  %v5169_v41 = vpack.c.bf16 %v494_v37, %v493_v36  ;;  %v520_v36 = vld [vmem:[%s5733_s13 + $0xf8] sm:$0xff] }
  0x65   : > { %5143 = vmatpush3.bf16.msra.mxu1 %v5142_v43  ;;  %4854 = vmatprep.mubr.msk.f32.mxu0 %vm5296_vm1, %v5295_v1  ;;  %v5172_v43 = vpack.c.bf16 %v496_v39, %v495_v38 }
  0x66   : > { %4861 = vmatprep.mubr.msk.f32.mxu1 %vm5296_vm1, %v5295_v1  ;;  %5144 = vmatprep.subr.bf16.mxu0 %v5294_v0 }
  0x67   : > { %4855 = vmatmul.mubr.msk.f32.vlgmr.msra.gmra.mrb[8].mxu0 %vm1708_vm3, %v5694_v52  ;;  %5147 = vmatprep.subr.bf16.mxu1 %v5294_v0 }
  0x68   : > { %4862 = vmatmul.mubr.msk.f32.vlgmr.msra.gmra.mrb[8].mxu1 %vm1708_vm3, %v5699_v54  ;;  %5146 = vmatpush3.bf16.msra.mxu0 %v5145_v53  ;;  %v5175_v53 = vpack.c.bf16 %v498_v49, %v497_v45 }
  0x69   : > { %5149 = vmatpush3.bf16.msra.mxu1 %v5148_v55  ;;  %4868 = vmatprep.mubr.msk.f32.mxu0 %vm5296_vm1, %v5295_v1  ;;  %v5178_v55 = vpack.c.bf16 %v500_v51, %v499_v50 }
  0x6a   : > { %4875 = vmatprep.mubr.msk.f32.mxu1 %vm5296_vm1, %v5295_v1  ;;  %5150 = vmatprep.subr.bf16.mxu0 %v5294_v0 }
  0x6b   : > { %4869 = vmatmul.mubr.msk.f32.vlgmr.msra.gmra.mrb[10].mxu0 %vm1708_vm3, %v5714_v63  ;;  %5153 = vmatprep.subr.bf16.mxu1 %v5294_v0 }
  0x6c   : > { %4876 = vmatmul.mubr.msk.f32.vlgmr.msra.gmra.mrb[10].mxu1 %vm1708_vm3, %v5719_v4  ;;  %5152 = vmatpush3.bf16.msra.mxu0 %v5151_v3  ;;  %v505_v3 = vld [vmem:[%s5733_s13 + $0x80] sm:$0xff] }
  0x6d   : > { %5155 = vmatpush3.bf16.msra.mxu1 %v5154_v5  ;;  %4882 = vmatprep.mubr.msk.f32.mxu0 %vm5296_vm1, %v5295_v1  ;;  %v506_v5 = vld [vmem:[%s5733_s13 + $0x88] sm:$0xff] }
  0x6e   : > { %4889 = vmatprep.mubr.msk.f32.mxu1 %vm5296_vm1, %v5295_v1  ;;  %5156 = vmatprep.subr.bf16.mxu0 %v5294_v0  ;;  %v5187_v6 = vpack.c.bf16 %v506_v5, %v505_v3 }
  0x6f   : > { %4883 = vmatmul.mubr.msk.f32.vlgmr.msra.gmra.mrb[12].mxu0 %vm1708_vm3, %v5741_v13  ;;  %5159 = vmatprep.subr.bf16.mxu1 %v5294_v0 }
  0x70   : > { %4890 = vmatmul.mubr.msk.f32.vlgmr.msra.gmra.mrb[12].mxu1 %vm1708_vm3, %v5746_v16  ;;  %5158 = vmatpush3.bf16.msra.mxu0 %v5157_v15  ;;  %v5193_v15 = vpack.c.bf16 %v510_v11, %v509_v9 }
  0x71   : > { %5161 = vmatpush3.bf16.msra.mxu1 %v5160_v17  ;;  %4896 = vmatprep.mubr.msk.f32.mxu0 %vm5296_vm1, %v5295_v1 }
  0x72   : > { %4903 = vmatprep.mubr.msk.f32.mxu1 %vm5296_vm1, %v5295_v1  ;;  %5162 = vmatprep.subr.bf16.mxu0 %v5294_v0 }
  0x73   : > { %4897 = vmatmul.mubr.msk.f32.vlgmr.msra.gmra.mrb[14].mxu0 %vm1708_vm3, %v5761_v26  ;;  %5165 = vmatprep.subr.bf16.mxu1 %v5294_v0 }
  0x74   : > { %4904 = vmatmul.mubr.msk.f32.vlgmr.msra.gmra.mrb[14].mxu1 %vm1708_vm3, %v5766_v31  ;;  %5164 = vmatpush3.bf16.msra.mxu0 %v5163_v27  ;;  %v517_v27 = vld [vmem:[%s5733_s13 + $0xe0] sm:$0xff] }
  0x75   : > { %5167 = vmatpush3.bf16.msra.mxu1 %v5166_v35  ;;  %4910 = vmatprep.mubr.msk.f32.mxu0 %vm5296_vm1, %v5295_v1  ;;  %v518_v35 = vld [vmem:[%s5733_s13 + $0xe8] sm:$0xff] }
  0x76   : > { %4917 = vmatprep.mubr.msk.f32.mxu1 %vm5296_vm1, %v5295_v1  ;;  %5168 = vmatprep.subr.bf16.mxu0 %v5294_v0 }
  0x77   : > { %4911 = vmatmul.mubr.msk.f32.vlgmr.msra.gmra.mrb[16].mxu0 %vm1708_vm3, %v5614_v8  ;;  %5171 = vmatprep.subr.bf16.mxu1 %v5294_v0  ;;  %v503_v8 = vld [vmem:[%s5733_s13 + $0x70] sm:$0xff] }
  0x78   : > { %4918 = vmatmul.mubr.msk.f32.vlgmr.msra.gmra.mrb[16].mxu1 %vm1708_vm3, %v5619_v10  ;;  %5170 = vmatpush3.bf16.msra.mxu0 %v5169_v41  ;;  %v504_v10 = vld [vmem:[%s5733_s13 + $0x78] sm:$0xff] }
  0x79   : > { %5173 = vmatpush3.bf16.msra.mxu1 %v5172_v43  ;;  %4924 = vmatprep.mubr.msk.f32.mxu0 %vm5296_vm1, %v5295_v1  ;;  %v5184_v59 = vpack.c.bf16 %v504_v10, %v503_v8 }
  0x7a   : > { %4931 = vmatprep.mubr.msk.f32.mxu1 %vm5296_vm1, %v5295_v1  ;;  %5174 = vmatprep.subr.bf16.mxu0 %v5294_v0 }
  0x7b   : > { %4925 = vmatmul.mubr.msk.f32.vlgmr.msra.gmra.mrb[18].mxu0 %vm1708_vm3, %v5634_v19  ;;  %5177 = vmatprep.subr.bf16.mxu1 %v5294_v0  ;;  %v507_v19 = vld [vmem:[%s5733_s13 + $0x90] sm:$0xff] }
  0x7c   : > { %4932 = vmatmul.mubr.msk.f32.vlgmr.msra.gmra.mrb[18].mxu1 %vm1708_vm3, %v5639_v22  ;;  %5176 = vmatpush3.bf16.msra.mxu0 %v5175_v53  ;;  %v508_v22 = vld [vmem:[%s5733_s13 + $0x98] sm:$0xff] }
  0x7d   : > { %5179 = vmatpush3.bf16.msra.mxu1 %v5178_v55  ;;  %4938 = vmatprep.mubr.msk.f32.mxu0 %vm5296_vm1, %v5295_v1  ;;  %v5190_v7 = vpack.c.bf16 %v508_v22, %v507_v19 }
  0x7e   : > { %4945 = vmatprep.mubr.msk.f32.mxu1 %vm5296_vm1, %v5295_v1  ;;  %5180 = vmatprep.subr.bf16.mxu0 %v5294_v0 }
  0x7f   : > { %4939 = vmatmul.mubr.msk.f32.vlgmr.msra.gmra.mrb[20].mxu0 %vm1708_vm3, %v5654_v29  ;;  %5183 = vmatprep.subr.bf16.mxu1 %v5294_v0  ;;  %v511_v29 = vld [vmem:[%s5733_s13 + $0xb0] sm:$0xff] }
  0x80   : > { %4946 = vmatmul.mubr.msk.f32.vlgmr.msra.gmra.mrb[20].mxu1 %vm1708_vm3, %v5659_v33  ;;  %5182 = vmatpush3.bf16.msra.mxu0 %v5181_v58  ;;  %v512_v33 = vld [vmem:[%s5733_s13 + $0xb8] sm:$0xff] }
  0x81   : > { %5185 = vmatpush3.bf16.msra.mxu1 %v5184_v59  ;;  %4952 = vmatprep.mubr.msk.f32.mxu0 %vm5296_vm1, %v5295_v1  ;;  %v5196_v17 = vpack.c.bf16 %v512_v33, %v511_v29 }
  0x82   : > { %4959 = vmatprep.mubr.msk.f32.mxu1 %vm5296_vm1, %v5295_v1  ;;  %5186 = vmatprep.subr.bf16.mxu0 %v5294_v0 }
  0x83   : > { %4953 = vmatmul.mubr.msk.f32.vlgmr.msra.gmra.mrb[22].mxu0 %vm1708_vm3, %v5674_v40  ;;  %5189 = vmatprep.subr.bf16.mxu1 %v5294_v0  ;;  %v515_v40 = vld [vmem:[%s5733_s13 + $0xd0] sm:$0xff] }
  0x84   : > { %4960 = vmatmul.mubr.msk.f32.vlgmr.msra.gmra.mrb[22].mxu1 %vm1708_vm3, %v5679_v42  ;;  %5188 = vmatpush3.bf16.msra.mxu0 %v5187_v6  ;;  %v516_v42 = vld [vmem:[%s5733_s13 + $0xd8] sm:$0xff] }
  0x85   : > { %5191 = vmatpush3.bf16.msra.mxu1 %v5190_v7  ;;  %4966 = vmatprep.mubr.msk.f32.mxu0 %vm5296_vm1, %v5295_v1  ;;  %v5202_v25 = vpack.c.bf16 %v516_v42, %v515_v40  ;;  %v4016_v7 = vcombine.high %v521_v56, %v521_v56 }
  0x86   : > { %4973 = vmatprep.mubr.msk.f32.mxu1 %vm5296_vm1, %v5295_v1  ;;  %5192 = vmatprep.subr.bf16.mxu0 %v5294_v0 }
  0x87   : > { %4967 = vmatmul.mubr.msk.f32.vlgmr.msra.gmra.mrb[24].mxu0 %vm1708_vm3, %v5694_v52  ;;  %5195 = vmatprep.subr.bf16.mxu1 %v5294_v0  ;;  %v519_v52 = vld [vmem:[%s5733_s13 + $0xf0] sm:$0xff] }
  0x88   : > { %4974 = vmatmul.mubr.msk.f32.vlgmr.msra.gmra.mrb[24].mxu1 %vm1708_vm3, %v5699_v54  ;;  %5194 = vmatpush3.bf16.msra.mxu0 %v5193_v15  ;;  %v5205_v54 = vpack.c.bf16 %v518_v35, %v517_v27  ;;  %v5208_v37 = vpack.c.bf16 %v520_v36, %v519_v52 }
  0x89   : > { %5197 = vmatpush3.bf16.msra.mxu1 %v5196_v17  ;;  %4980 = vmatprep.mubr.msk.f32.mxu0 %vm5296_vm1, %v5295_v1 }
  0x8a   : > { %4987 = vmatprep.mubr.msk.f32.mxu1 %vm5296_vm1, %v5295_v1  ;;  %5198 = vmatprep.subr.bf16.mxu0 %v5294_v0 }
  0x8b   : > { %4981 = vmatmul.mubr.msk.f32.vlgmr.msra.gmra.mrb[26].mxu0 %vm1708_vm3, %v5714_v63  ;;  %5201 = vmatprep.subr.bf16.mxu1 %v5294_v0 }
  0x8c   : > { %4988 = vmatmul.mubr.msk.f32.vlgmr.msra.gmra.mrb[26].mxu1 %vm1708_vm3, %v5719_v4  ;;  %5200 = vmatpush3.bf16.msra.mxu0 %v5199_v24 }
  0x8d   : > { %5203 = vmatpush3.bf16.msra.mxu1 %v5202_v25  ;;  %4994 = vmatprep.mubr.msk.f32.mxu0 %vm5296_vm1, %v5295_v1 }
  0x8e   : > { %5001 = vmatprep.mubr.msk.f32.mxu1 %vm5296_vm1, %v5295_v1  ;;  %5204 = vmatprep.subr.bf16.mxu0 %v5294_v0 }
  0x8f   : > { %4995 = vmatmul.mubr.msk.f32.vlgmr.msra.gmra.mrb[28].mxu0 %vm1708_vm3, %v5741_v13  ;;  %5207 = vmatprep.subr.bf16.mxu1 %v5294_v0  ;;  %v5297_v13 = vmov 1966171168  }
  0x90   : > { %5002 = vmatmul.mubr.msk.f32.vlgmr.msra.gmra.mrb[28].mxu1 %vm1708_vm3, %v5746_v16  ;;  %5206 = vmatpush3.bf16.msra.mxu0 %v5205_v54  ;;  %v4018_v16 = vunpack.c.l.s4 %v5297_v13 }
  0x91   : > { %5209 = vmatpush3.bf16.msra.mxu1 %v5208_v37  ;;  %5008 = vmatprep.mubr.msk.f32.mxu0 %vm5296_vm1, %v5295_v1  ;;  %v522_v37 = vld [vmem:[%s5901_s24 + $0x8] sm:$0xff] }
  0x92   : > { %5015 = vmatprep.mubr.msk.f32.mxu1 %vm5296_vm1, %v5295_v1  ;;  %v4019_v43 = vunpack.c.0.s8 %v4018_v16 }
  0x93   : > { %5009 = vmatmul.mubr.msk.f32.vlgmr.msra.gmra.mrb[30].mxu0 %vm1708_vm3, %v5761_v26  ;;  %v4020_v26 = vlaneseq }
  0x94   : > { %5016 = vmatmul.mubr.msk.f32.vlgmr.msra.gmra.mrb[30].mxu1 %vm1708_vm3, %v5766_v31 }
  0x95   : > { %v4021_v45 = vshrl.u32 %v4020_v26, 7 }
  0x97   : > { %v5907_v55 = vsub.s32 %v4019_v43, %v4021_v45  ;;  %v5922_v15 = vsub.s32 0, %v4021_v45 }
  0x99   : > { %v4023_v59 = vrot.slane %v521_v56, %v5907_v55  ;;  %v4030_v23 = vrot.slane %v4016_v7, %v5907_v55 }
  0x9b   : > { %v4031_v6 = vcombine.high %v4023_v59, %v4023_v59  ;;  %v4039_v33 = vrot.slane %v4023_v59, %v5907_v55  ;;  %v4032_v54 = vcombine.high %v4030_v23, %v4030_v23  ;;  %v4046_v26 = vrot.slane %v4030_v23, %v5907_v55 }
  0x9c   : > { %v4065_v59 = vcombine.high %v522_v37, %v522_v37 }
  0x9d   : > { %v4053_v21 = vrot.slane %v4031_v6, %v5907_v55  ;;  %v4061_v42 = vcombine.high %v4039_v33, %v4039_v33  ;;  %v4117_v27 = vrot.slane %v4039_v33, %v5922_v15  ;;  %v4133_v56 = vrot.slane %v4046_v26, %v5922_v15 }
  0x9f   : > { %v4063_v35 = vcombine.high %v4053_v21, %v4053_v21  ;;  %v4121_v36 = vrot.slane %v4053_v21, %v5922_v15  ;;  %v4194_v13 = vmul.f32 %v4117_v27, %v5415_v18 }
  0xa1   : > { %v4129_v16 = vrot.slane %v4063_v35, %v5922_v15 }
 0x12a   : > { %v1778_v0 = vpop.f32.mrb[0].mxu0 }
 0x12b   : > { %2878 = vst.msk [vmem:[%s5888_s17] sm:$0x3] %vm2877_vm4, %v1778_v0  ;;  %v1851_v1 = vpop.f32.mrb[0].mxu1  ;;  %v4800_v63 = vpop.f32.mrb[1].mxu0 }
 0x12c   : > { %2879 = vst.msk [vmem:[%s5888_s17 + $0x2] sm:$0x3] %vm2877_vm4, %v1851_v1  ;;  %v4807_v4 = vpop.f32.mrb[1].mxu1  ;;  %v4125_v1 = vrot.slane %v4061_v42, %v5922_v15 }
 0x12e   : > { %v1924_v31 = vpop.f32.mrb[2].mxu0  ;;  %v4196_v45 = vmul.f32 %v4125_v1, %v5439_v32 }
 0x12f   : > { %2880 = vst.msk [vmem:[%s5888_s17 + $0x4] sm:$0x3] %vm2877_vm4, %v1924_v31  ;;  %v1997_v38 = vpop.f32.mrb[2].mxu1  ;;  %v4814_v39 = vpop.f32.mrb[3].mxu0 }
 0x130   : > { %2881 = vst.msk [vmem:[%s5888_s17 + $0x6] sm:$0x3] %vm2877_vm4, %v1997_v38  ;;  %v4821_v41 = vpop.f32.mrb[3].mxu1  ;;  %v4195_v38 = vmul.f32 %v4121_v36, %v5418_v20  ;;  %v4060_v39 = vrot.slane %v4032_v54, %v5907_v55 }
 0x131   : > { %v4072_v41 = vrot.slane %v522_v37, %v5907_v55 }
 0x132   : > { %v2070_v49 = vpop.f32.mrb[4].mxu0  ;;  %v4137_v20 = vrot.slane %v4060_v39, %v5922_v15 }
 0x133   : > { %2882 = vst.msk [vmem:[%s5888_s17 + $0x8] sm:$0x3] %vm2877_vm4, %v2070_v49  ;;  %v2143_v50 = vpop.f32.mrb[4].mxu1  ;;  %v4828_v51 = vpop.f32.mrb[5].mxu0  ;;  %v4062_v49 = vcombine.high %v4046_v26, %v4046_v26  ;;  %v4088_v7 = vrot.slane %v4072_v41, %v5907_v55 }
 0x134   : > { %2883 = vst.msk [vmem:[%s5888_s17 + $0xa] sm:$0x3] %vm2877_vm4, %v2143_v50  ;;  %v4835_v53 = vpop.f32.mrb[5].mxu1 }
 0x135   : > { %v4197_v53 = vmul.f32 %v4129_v16, %v5442_v34  ;;  %v4198_v34 = vmul.f32 %v4133_v56, %v5463_v46  ;;  %v4110_v27 = vcombine.high %v4088_v7, %v4088_v7 }
 0x136   : > { %v2216_v57 = vpop.f32.mrb[6].mxu0 }
 0x137   : > { %2884 = vst.msk [vmem:[%s5888_s17 + $0xc] sm:$0x3] %vm2877_vm4, %v2216_v57  ;;  %v2289_v8 = vpop.f32.mrb[6].mxu1  ;;  %v4842_v10 = vpop.f32.mrb[7].mxu0  ;;  %v4064_v57 = vcombine.high %v4060_v39, %v4060_v39 }
 0x138   : > { %2885 = vst.msk [vmem:[%s5888_s17 + $0xe] sm:$0x3] %vm2877_vm4, %v2289_v8  ;;  %v4849_v58 = vpop.f32.mrb[7].mxu1 }
 0x139   : > { %v4080_v58 = vcombine.high %v4072_v41, %v4072_v41  ;;  %v4145_v6 = vrot.slane %v4064_v57, %v5922_v15 }
 0x13a   : > { %v2362_v3 = vpop.f32.mrb[8].mxu0 }
 0x13b   : > { %2886 = vst.msk [vmem:[%s5888_s17 + $0x10] sm:$0x3] %vm2877_vm4, %v2362_v3  ;;  %v2435_v5 = vpop.f32.mrb[8].mxu1  ;;  %v4856_v19 = vpop.f32.mrb[9].mxu0  ;;  %v4141_v3 = vrot.slane %v4062_v49, %v5922_v15  ;;  %v4102_v33 = vrot.slane %v4080_v58, %v5907_v55 }
 0x13c   : > { %2887 = vst.msk [vmem:[%s5888_s17 + $0x12] sm:$0x3] %vm2877_vm4, %v2435_v5  ;;  %v4863_v22 = vpop.f32.mrb[9].mxu1 }
 0x13d   : > { %v4200_v23 = vmul.f32 %v4141_v3, %v5487_v60  ;;  %v4112_v36 = vcombine.high %v4102_v33, %v4102_v33 }
 0x13e   : > { %v2508_v9 = vpop.f32.mrb[10].mxu0 }
 0x13f   : > { %2888 = vst.msk [vmem:[%s5888_s17 + $0x14] sm:$0x3] %vm2877_vm4, %v2508_v9  ;;  %v2581_v11 = vpop.f32.mrb[10].mxu1  ;;  %v4870_v29 = vpop.f32.mrb[11].mxu0 }
 0x140   : > { %2889 = vst.msk [vmem:[%s5888_s17 + $0x16] sm:$0x3] %vm2877_vm4, %v2581_v11  ;;  %v4877_v17 = vpop.f32.mrb[11].mxu1  ;;  %v4199_v29 = vmul.f32 %v4137_v20, %v5466_v48 }
 0x141   : > { %v4079_v17 = vrot.slane %v4065_v59, %v5907_v55 }
 0x142   : > { %v2654_v40 = vpop.f32.mrb[12].mxu0 }
 0x143   : > { %2890 = vst.msk [vmem:[%s5888_s17 + $0x18] sm:$0x3] %vm2877_vm4, %v2654_v40  ;;  %v2727_v24 = vpop.f32.mrb[12].mxu1  ;;  %v4884_v25 = vpop.f32.mrb[13].mxu0  ;;  %v4081_v54 = vcombine.high %v4079_v17, %v4079_v17 }
 0x144   : > { %2891 = vst.msk [vmem:[%s5888_s17 + $0x1a] sm:$0x3] %vm2877_vm4, %v2727_v24  ;;  %v4891_v52 = vpop.f32.mrb[13].mxu1  ;;  %v4201_v24 = vmul.f32 %v4145_v6, %v5490_v62  ;;  %v4149_v25 = vrot.slane %v4088_v7, %v5922_v15  ;;  %v4157_v62 = vrot.slane %v4110_v27, %v5922_v15 }
 0x145   : > { %v4153_v52 = vrot.slane %v4102_v33, %v5922_v15 }
 0x146   : > { %v2800_v0 = vpop.f32.mrb[14].mxu0 }
 0x147   : > { %2892 = vst.msk [vmem:[%s5888_s17 + $0x1c] sm:$0x3] %vm2877_vm4, %v2800_v0  ;;  %v2873_v63 = vpop.f32.mrb[14].mxu1  ;;  %v4898_v4 = vpop.f32.mrb[15].mxu0  ;;  %v4203_v26 = vmul.f32 %v4153_v52, %v5514_v14 }
 0x148   : > { %2893 = vst.msk [vmem:[%s5888_s17 + $0x1e] sm:$0x3] %vm2877_vm4, %v2873_v63  ;;  %v4905_v31 = vpop.f32.mrb[15].mxu1  ;;  %v4202_v63 = vmul.f32 %v4149_v25, %v5511_v12  ;;  %v4095_v4 = vrot.slane %v4079_v17, %v5907_v55 }
 0x149   : > { %v4161_v31 = vrot.slane %v4112_v36, %v5922_v15 }
 0x14a   : > { %v2960_v43 = vpop.f32.mrb[16].mxu0  ;;  %v4165_v49 = vrot.slane %v4095_v4, %v5922_v15 }
 0x14b   : > { %v4210_v50 = vadd.f32 %v4194_v13, %v2960_v43  ;;  %v3030_v51 = vpop.f32.mrb[16].mxu1  ;;  %v4912_v18 = vpop.f32.mrb[17].mxu0  ;;  %v4205_v14 = vmul.f32 %v4161_v31, %v5538_v30 }
 0x14c   : > { %v4211_v8 = vadd.f32 %v4195_v38, %v3030_v51  ;;  %v4919_v10 = vpop.f32.mrb[17].mxu1  ;;  %v4109_v38 = vrot.slane %v4081_v54, %v5907_v55 }
 0x14d   : > { %4227 = vst.msk [vmem:[#allocation2] sm:$0x3] %vm360_vm0, %v4210_v50  ;;  %v4111_v50 = vcombine.high %v4095_v4, %v4095_v4 }
 0x14e   : > { %4228 = vst.msk [vmem:[#allocation2 + $0x2] sm:$0x3] %vm360_vm0, %v4211_v8  ;;  %v3100_v32 = vpop.f32.mrb[18].mxu0  ;;  %v4113_v55 = vcombine.high %v4109_v38, %v4109_v38 }
 0x14f   : > { %v4212_v5 = vadd.f32 %v4196_v45, %v3100_v32  ;;  %v3170_v19 = vpop.f32.mrb[18].mxu1  ;;  %v4926_v22 = vpop.f32.mrb[19].mxu0  ;;  %v4204_v45 = vmul.f32 %v4157_v62, %v5535_v28  ;;  %v4206_v28 = vmul.f32 %v4165_v49, %v5560_v44  ;;  %v4173_v20 = vrot.slane %v4111_v50, %v5922_v15 }
 0x150   : > { %v4213_v9 = vadd.f32 %v4197_v53, %v3170_v19  ;;  %v4933_v11 = vpop.f32.mrb[19].mxu1  ;;  %v4169_v53 = vrot.slane %v4109_v38, %v5922_v15  ;;  %v4177_v30 = vrot.slane %v4113_v55, %v5922_v15 }
 0x151   : > { %4229 = vst.msk [vmem:[#allocation2 + $0x4] sm:$0x3] %vm360_vm0, %v4212_v5 }
 0x152   : > { %4230 = vst.msk [vmem:[#allocation2 + $0x6] sm:$0x3] %vm360_vm0, %v4213_v9  ;;  %v3240_v21 = vpop.f32.mrb[20].mxu0  ;;  %v4207_v32 = vmul.f32 %v4169_v53, %v5563_v47  ;;  %v4209_v7 = vmul.f32 %v4177_v30, %v5594_v2 }
 0x153   : > { %v4214_v46 = vadd.f32 %v4198_v34, %v3240_v21  ;;  %v3310_v40 = vpop.f32.mrb[20].mxu1  ;;  %v4940_v42 = vpop.f32.mrb[21].mxu0  ;;  %v4208_v34 = vmul.f32 %v4173_v20, %v5592_v61 }
 0x154   : > { %v4215_v48 = vadd.f32 %v4199_v29, %v3310_v40  ;;  %v4947_v35 = vpop.f32.mrb[21].mxu1 }
 0x155   : > { %4231 = vst.msk [vmem:[#allocation2 + $0x8] sm:$0x3] %vm360_vm0, %v4214_v46 }
 0x156   : > { %4232 = vst.msk [vmem:[#allocation2 + $0xa] sm:$0x3] %vm360_vm0, %v4215_v48  ;;  %v3380_v37 = vpop.f32.mrb[22].mxu0 }
 0x157   : > { %v4216_v60 = vadd.f32 %v4200_v23, %v3380_v37  ;;  %v3450_v0 = vpop.f32.mrb[22].mxu1  ;;  %v4954_v1 = vpop.f32.mrb[23].mxu0 }
 0x158   : > { %v4217_v13 = vadd.f32 %v4201_v24, %v3450_v0  ;;  %v4961_v16 = vpop.f32.mrb[23].mxu1 }
 0x159   : > { %4233 = vst.msk [vmem:[#allocation2 + $0xc] sm:$0x3] %vm360_vm0, %v4216_v60 }
 0x15a   : > { %4234 = vst.msk [vmem:[#allocation2 + $0xe] sm:$0x3] %vm360_vm0, %v4217_v13  ;;  %v3520_v39 = vpop.f32.mrb[24].mxu0 }
 0x15b   : > { %v4218_v41 = vadd.f32 %v4202_v63, %v3520_v39  ;;  %v3590_v43 = vpop.f32.mrb[24].mxu1  ;;  %v4968_v12 = vpop.f32.mrb[25].mxu0 }
 0x15c   : > { %v4219_v51 = vadd.f32 %v4203_v26, %v3590_v43  ;;  %v4975_v18 = vpop.f32.mrb[25].mxu1 }
 0x15d   : > { %4235 = vst.msk [vmem:[#allocation2 + $0x10] sm:$0x3] %vm360_vm0, %v4218_v41 }
 0x15e   : > { %4236 = vst.msk [vmem:[#allocation2 + $0x12] sm:$0x3] %vm360_vm0, %v4219_v51  ;;  %v3660_v56 = vpop.f32.mrb[26].mxu0 }
 0x15f   : > { %v4220_v57 = vadd.f32 %v4204_v45, %v3660_v56  ;;  %v3730_v8 = vpop.f32.mrb[26].mxu1  ;;  %v4982_v10 = vpop.f32.mrb[27].mxu0 }
 0x160   : > { %v4221_v58 = vadd.f32 %v4205_v14, %v3730_v8  ;;  %v4989_v59 = vpop.f32.mrb[27].mxu1 }
 0x161   : > { %4237 = vst.msk [vmem:[#allocation2 + $0x14] sm:$0x3] %vm360_vm0, %v4220_v57 }
 0x162   : > { %4238 = vst.msk [vmem:[#allocation2 + $0x16] sm:$0x3] %vm360_vm0, %v4221_v58  ;;  %v3800_v3 = vpop.f32.mrb[28].mxu0 }
 0x163   : > { %v4222_v5 = vadd.f32 %v4206_v28, %v3800_v3  ;;  %v3870_v19 = vpop.f32.mrb[28].mxu1  ;;  %v4996_v22 = vpop.f32.mrb[29].mxu0 }
 0x164   : > { %v4223_v6 = vadd.f32 %v4207_v32, %v3870_v19  ;;  %v5003_v44 = vpop.f32.mrb[29].mxu1 }
 0x165   : > { %4239 = vst.msk [vmem:[#allocation2 + $0x18] sm:$0x3] %vm360_vm0, %v4222_v5 }
 0x166   : > { %4240 = vst.msk [vmem:[#allocation2 + $0x1a] sm:$0x3] %vm360_vm0, %v4223_v6  ;;  %v3940_v47 = vpop.f32.mrb[30].mxu0 }
 0x167   : > { %v4224_v15 = vadd.f32 %v4208_v34, %v3940_v47  ;;  %v4010_v9 = vpop.f32.mrb[30].mxu1  ;;  %v5010_v11 = vpop.f32.mrb[31].mxu0 }
 0x168   : > { %v4225_v29 = vadd.f32 %v4209_v7, %v4010_v9  ;;  %v5017_v33 = vpop.f32.mrb[31].mxu1 }
 0x169   : > { %4241 = vst.msk [vmem:[#allocation2 + $0x1c] sm:$0x3] %vm360_vm0, %v4224_v15 }
 0x16a   : > { %4242 = vst.msk [vmem:[#allocation2 + $0x1e] sm:$0x3] %vm360_vm0, %v4225_v29 }
 0x16b PF: > { %s15_s20 = sadd.s32 1, %s5292_s20   ;;  %s6009_s18 = smov %s5288_s19 }
 0x16c   : > { %p12_p6 = scmp.ge.s32.totalorder %s15_s20, 4   ;;  %s6010_s19 = smov %s6012_s21 }
 0x16e   :  { %14 = sbr.rel (!%p12_p6) target bundleno = 2 (0x2), region = 86 }

</bundles_post_ra>
